<compile_context>
chip_gen: v7x
topology: tpu7x:2x2x1
jax: 0.10.0
libtpu: 0.0.40
codegen_flags: <defaults>
</compile_context>

<pallas_src>
import functools
import math

import jax
import jax.numpy as jnp
from jax.experimental import pallas as pl
from jax.experimental.pallas import tpu as pltpu

LOG2E = math.log2(math.e)       # np.log2(np.exp(1)) — MI returned in bits, as in the spec.
_NEG_LARGE = -1.0e30            # finite "-inf": fully-masked tiles/cores never make NaNs.


def _mine_kernel(x_ref, yy_ref, w1x_ref, w1y_ref, b1_ref, w2_ref,
                 out_ref, sum_ref, m_ref, s_ref,
                 *, tile_rows, tiles_per_core, batch_size, needs_mask):
    i = pl.program_id(1)

    @pl.when(i == 0)
    def _init():
        sum_ref[...] = jnp.zeros((1, 1), jnp.float32)
        m_ref[...] = jnp.full((1, 1), _NEG_LARGE, jnp.float32)
        s_ref[...] = jnp.zeros((1, 1), jnp.float32)

    tb = tile_rows

    # x-side projection: computed once, shared by joint & marginal halves (MXU).
    hx = jnp.dot(x_ref[...], w1x_ref[...], preferred_element_type=jnp.float32)

    # y-side: y and y[perm] arrive stacked; single [2*TB, H2] x [H2, H] MXU pass.
    yy = yy_ref[...].reshape(2 * tb, yy_ref.shape[-1])
    hy = jnp.dot(yy, w1y_ref[...], preferred_element_type=jnp.float32)

    b1 = b1_ref[...]                                       # [1, H] f32
    h_joint = jnp.maximum(hx + hy[:tb] + b1, 0.0)          # [TB, H]
    h_marg = jnp.maximum(hx + hy[tb:] + b1, 0.0)           # [TB, H]

    w2 = w2_ref[...]                                       # [1, H] f32

    if needs_mask:
        # Only emitted when padded rows exist (B not a multiple of the tiling).
        row0 = (pl.program_id(0) * tiles_per_core + i) * tb
        row_ids = jax.lax.broadcasted_iota(jnp.int32, (tb, 1), 0) + row0
        valid = row_ids < batch_size                       # [TB, 1] bool
        hj = jnp.where(valid, h_joint, 0.0)
    else:
        hj = h_joint

    # ---- Joint half: mean(h @ w2) == (column-sum of h) . w2 / B  (b2 added in JAX,
    #      it cancels between the two terms anyway). No per-row logits needed.
    colsum = jnp.sum(hj, axis=0, keepdims=True)                   # [1, H]  (XLU)
    sum_ref[...] += jnp.sum(colsum * w2, keepdims=True)           # (1, 1)

    # ---- Marginal half: per-row logits (exp is nonlinear) — VPU mult + reduce.
    logit_m = jnp.sum(h_marg * w2, axis=-1, keepdims=True)        # [TB, 1]
    if needs_mask:
        logit_m = jnp.where(valid, logit_m, _NEG_LARGE)

    # Online (max-stabilized) log-sum-exp accumulation across tiles.
    m_old = m_ref[...]
    m_new = jnp.maximum(m_old, jnp.max(logit_m, keepdims=True))   # (1, 1)
    s_ref[...] = s_ref[...] * jnp.exp(m_old - m_new) + jnp.sum(
        jnp.exp(logit_m - m_new), keepdims=True)
    m_ref[...] = m_new

    @pl.when(i == pl.num_programs(1) - 1)
    def _finalize():
        # Per-core partials packed into a lane-dense (1, 1, 128) output row:
        # lane 0 = sum of joint logits, lane 1 = running max, lane 2 = running exp-sum.
        lane = jax.lax.broadcasted_iota(jnp.int32, (1, 1, 128), 2)
        sum_v = sum_ref[...].reshape(1, 1, 1)
        m_v = m_ref[...].reshape(1, 1, 1)
        s_v = s_ref[...].reshape(1, 1, 1)
        out_ref[...] = jnp.where(lane == 0, sum_v,
                                 jnp.where(lane == 1, m_v,
                                           jnp.where(lane == 2, s_v, 0.0)))


def mine_forward(x, y, w1, b1, w2, b2, perm, *, tile_rows=None, num_cores=None,
                 compute_dtype=jnp.bfloat16):
    """Forward pass of MINE.

    x: [B, H1], y: [B, H2], perm: [B] int permutation of range(B).
    w1: [H1+H2, H] (transposed vs. PyTorch [out, in]), b1: [H], w2: [H, 1], b2: [1].
    Returns the scalar MI estimate (float32, in bits — matches the spec's log2(e)).
    """
    B, H1 = x.shape
    H2 = y.shape[1]
    H = w1.shape[1]

    dt_size = jnp.dtype(compute_dtype).itemsize

    def round16(n):
        return ((n + 15) // 16) * 16

    if tile_rows is None:
        # Conservative VMEM budget (covers v7x's 64 MiB physical / 32 MiB scoped):
        # double-buffered bf16 row tiles + double-buffered weight blocks + f32
        # intermediates (hx / hy / h_joint / h_marg / products).
        budget = 20 * 1024 * 1024
        tile_rows = 16
        for tb in (2048, 1024, 512, 256, 128, 64, 32, 16):
            est = (2 * tb * (H1 + 2 * H2) * dt_size
                   + 2 * ((H1 + H2) * H * dt_size + 2 * H * 4)
                   + 6 * tb * H * 4)
            if est <= budget:
                tile_rows = tb
                break
        tile_rows = min(tile_rows, round16(B))
    assert tile_rows % 16 == 0, "tile_rows must be a multiple of 16 (bf16 sublane packing)"

    tiles = -(-B // tile_rows)
    if num_cores is None:
        num_cores = 2 if tiles >= 2 else 1   # v7x megacore split; harmless on v5e/v6e.
    tiles_per_core = -(-tiles // num_cores)
    padded_B = num_cores * tiles_per_core * tile_rows
    needs_mask = padded_B != B

    # Cast once, then gather/stack on the already-cast array (half the gather bytes
    # when compute_dtype is bf16). XLA fuses cast + gather + stack into one pass.
    xc = jnp.asarray(x).astype(compute_dtype)
    yc = jnp.asarray(y).astype(compute_dtype)
    yy = jnp.stack([yc, yc[jnp.asarray(perm)]], axis=0)          # [2, B, H2]

    if padded_B != B:
        pad = padded_B - B
        xc = jnp.pad(xc, ((0, pad), (0, 0)))
        yy = jnp.pad(yy, ((0, 0), (0, pad), (0, 0)))

    # Split W1 so the x-side projection is computed once and reused.
    w1 = jnp.asarray(w1)
    w1x = w1[:H1, :].astype(compute_dtype)
    w1y = w1[H1:, :].astype(compute_dtype)
    b1_2d = jnp.asarray(b1, jnp.float32).reshape(1, H)
    w2_row = jnp.asarray(w2, jnp.float32).reshape(1, H)
    b2_s = jnp.asarray(b2, jnp.float32).reshape(())

    kernel = functools.partial(_mine_kernel, tile_rows=tile_rows,
                               tiles_per_core=tiles_per_core,
                               batch_size=B, needs_mask=needs_mask)

    parts = pl.pallas_call(
        kernel,
        out_shape=jax.ShapeDtypeStruct((num_cores, 1, 128), jnp.float32),
        grid=(num_cores, tiles_per_core),
        in_specs=[
            pl.BlockSpec((tile_rows, H1), lambda c, i: (c * tiles_per_core + i, 0)),
            pl.BlockSpec((2, tile_rows, H2), lambda c, i: (0, c * tiles_per_core + i, 0)),
            pl.BlockSpec((H1, H), lambda c, i: (0, 0)),      # W1x
            pl.BlockSpec((H2, H), lambda c, i: (0, 0)),      # W1y
            pl.BlockSpec((1, H), lambda c, i: (0, 0)),       # b1
            pl.BlockSpec((1, H), lambda c, i: (0, 0)),       # w2 (row layout)
        ],
        out_specs=pl.BlockSpec((1, 1, 128), lambda c, i: (c, 0, 0)),
        scratch_shapes=[pltpu.VMEM((1, 1), jnp.float32)] * 3,   # sum_xy, m, s
        compiler_params=pltpu.CompilerParams(
            dimension_semantics=("parallel", "arbitrary"),      # rows split / reduction
            vmem_limit_bytes=48 * 1024 * 1024),
    )(xc, yy, w1x, w1y, b1_2d, w2_row)

    # Combine the per-core partials (trivial scalar math in JAX).
    sum_xy = jnp.sum(parts[:, 0, 0])
    m = parts[:, 0, 1]
    s = parts[:, 0, 2]
    m_glob = jnp.max(m)
    s_glob = jnp.sum(s * jnp.exp(m - m_glob))
    inv_b = jnp.float32(1.0 / B)
    mean_xy = sum_xy * inv_b + b2_s
    log_mean_exp = m_glob + jnp.log(s_glob * inv_b) + b2_s
    return LOG2E * (mean_xy - log_mean_exp)


def _init_linear(key, fan_in, fan_out):
    """Deterministic init mimicking nn.Linear default (uniform +/- 1/sqrt(fan_in))."""
    kw, kb = jax.random.split(key)
    bound = 1.0 / math.sqrt(fan_in)
    w = jax.random.uniform(kw, (fan_in, fan_out), jnp.float32, -bound, bound)  # [in, out]
    b = jax.random.uniform(kb, (fan_out,), jnp.float32, -bound, bound)
    return w, b


if __name__ == "__main__":
    def reference_mi(x, y, perm, w1, b1, w2, b2):
        # Pure-JAX reference matching the PyTorch module's math exactly.
        B = x.shape[0]
        inputs = jnp.concatenate(
            [jnp.concatenate([x, x], 0), jnp.concatenate([y, y[perm]], 0)], 1)
        h = jnp.maximum(inputs @ w1 + b1, 0.0)
        logits = h @ w2 + b2
        return LOG2E * (jnp.mean(logits[:B])
                        - jnp.log(jnp.mean(jnp.exp(logits[B:]))))

    # ---- Shapes consistent with the module: Linear(H1+H2 -> H), Linear(H -> 1) ----
    B, H1, H2, H = 8, 16, 16, 32
    root = jax.random.PRNGKey(0)
    kx, ky, k1, k2, kp = jax.random.split(root, 5)
    x = jax.random.normal(kx, (B, H1), jnp.float32)
    y = jax.random.normal(ky, (B, H2), jnp.float32)
    w1, b1 = _init_linear(k1, H1 + H2, H)
    w2, b2 = _init_linear(k2, H, 1)
    perm = jax.random.permutation(kp, B)     # torch.randperm equivalent
    mi_ref = reference_mi(x, y, perm, w1, b1, w2, b2)

    # Case 1: f32 operands, single tile, partial-tile masking (B=8 padded to 16).
    mi_f32 = jax.block_until_ready(
        mine_forward(x, y, w1, b1, w2, b2, perm, compute_dtype=jnp.float32))
    assert jnp.allclose(mi_f32, mi_ref, atol=1e-4, rtol=1e-4), (mi_f32, mi_ref)

    # Case 2: default bf16 matmul operands (MXU-native), f32 accumulate/epilogue.
    mi_bf16 = jax.block_until_ready(mine_forward(x, y, w1, b1, w2, b2, perm))
    assert bool(jnp.isfinite(mi_bf16))
    assert jnp.allclose(mi_bf16, mi_ref, atol=5e-2, rtol=5e-2), (mi_bf16, mi_ref)

    # Case 3: multi-tile, 2-way core split, odd tile count + padded last rows.
    B2 = 40
    kx2, ky2, kp2 = jax.random.split(jax.random.PRNGKey(1), 3)
    x2 = jax.random.normal(kx2, (B2, H1), jnp.float32)
    y2 = jax.random.normal(ky2, (B2, H2), jnp.float32)
    perm2 = jax.random.permutation(kp2, B2)
    mi2 = jax.block_until_ready(
        mine_forward(x2, y2, w1, b1, w2, b2, perm2,
                     tile_rows=16, num_cores=2, compute_dtype=jnp.float32))
    mi2_ref = reference_mi(x2, y2, perm2, w1, b1, w2, b2)
    assert jnp.allclose(mi2, mi2_ref, atol=1e-4, rtol=1e-4), (mi2, mi2_ref)

    # Case 4: exact multiple of tile_rows * num_cores — select-free fast path.
    B3 = 64
    kx3, ky3, kp3 = jax.random.split(jax.random.PRNGKey(2), 3)
    x3 = jax.random.normal(kx3, (B3, H1), jnp.float32)
    y3 = jax.random.normal(ky3, (B3, H2), jnp.float32)
    perm3 = jax.random.permutation(kp3, B3)
    mi3 = jax.block_until_ready(
        mine_forward(x3, y3, w1, b1, w2, b2, perm3,
                     tile_rows=32, num_cores=2, compute_dtype=jnp.float32))
    mi3_ref = reference_mi(x3, y3, perm3, w1, b1, w2, b2)
    assert jnp.allclose(mi3, mi3_ref, atol=1e-4, rtol=1e-4), (mi3, mi3_ref)

    print("KERNEL_OK")
</pallas_src>

<mosaic_0001>
module attributes {stable_mosaic.version = 11 : i64} {
  func.func @_mine_kernel(%arg0: i32, %arg1: i32, %arg2: memref<16x16xf32, #tpu.memory_space<vmem>>, %arg3: memref<2x16x16xf32, #tpu.memory_space<vmem>>, %arg4: memref<16x32xf32, #tpu.memory_space<vmem>>, %arg5: memref<16x32xf32, #tpu.memory_space<vmem>>, %arg6: memref<1x32xf32, #tpu.memory_space<vmem>>, %arg7: memref<1x32xf32, #tpu.memory_space<vmem>>, %arg8: memref<1x1x128xf32, #tpu.memory_space<vmem>>, %arg9: memref<1x1xf32, #tpu.memory_space<vmem>>, %arg10: memref<1x1xf32, #tpu.memory_space<vmem>>, %arg11: memref<1x1xf32, #tpu.memory_space<vmem>>) attributes {dimension_semantics = [#tpu.dimension_semantics<parallel>, #tpu.dimension_semantics<arbitrary>], iteration_bounds = array<i64: 1, 1>, scalar_prefetch = 0 : i64, scratch_operands = 3 : i64, tpu.core_type = #tpu.core_type<tc>, window_params = [{transform_indices = @transform_0, window_bounds = array<i64: 16, 16>}, {transform_indices = @transform_1, window_bounds = array<i64: 2, 16, 16>}, {pipeline_mode = #tpu.pipeline_mode<synchronous>, transform_indices = @transform_2, window_bounds = array<i64: 16, 32>}, {pipeline_mode = #tpu.pipeline_mode<synchronous>, transform_indices = @transform_3, window_bounds = array<i64: 16, 32>}, {pipeline_mode = #tpu.pipeline_mode<synchronous>, transform_indices = @transform_4, window_bounds = array<i64: 1, 32>}, {pipeline_mode = #tpu.pipeline_mode<synchronous>, transform_indices = @transform_5, window_bounds = array<i64: 1, 32>}, {transform_indices = @transform_6, window_bounds = array<i64: 1, 1, 128>}]} {
    %c0_i32 = arith.constant 0 : i32
    %0 = arith.cmpi eq, %arg1, %c0_i32 : i32
    %1 = arith.extui %0 : i1 to i32
    %c0_i32_0 = arith.constant 0 : i32
    %2 = arith.cmpi ne, %1, %c0_i32_0 : i32
    scf.if %2 {
      %cst_37 = arith.constant 0.000000e+00 : f32
      %78 = vector.broadcast %cst_37 : f32 to vector<1x1xf32>
      %c0_38 = arith.constant 0 : index
      %c0_39 = arith.constant 0 : index
      %79 = vector.load %arg9[%c0_38, %c0_39] : memref<1x1xf32, #tpu.memory_space<vmem>>, vector<1x1xf32>
      tpu.vector_store %arg9[%c0_38, %c0_39], %78 {strides = array<i32>} : memref<1x1xf32, #tpu.memory_space<vmem>>, vector<1x1xf32>,
      %cst_40 = arith.constant -1.000000e+30 : f32
      %80 = vector.broadcast %cst_40 : f32 to vector<1x1xf32>
      %c0_41 = arith.constant 0 : index
      %c0_42 = arith.constant 0 : index
      %81 = vector.load %arg10[%c0_41, %c0_42] : memref<1x1xf32, #tpu.memory_space<vmem>>, vector<1x1xf32>
      tpu.vector_store %arg10[%c0_41, %c0_42], %80 {strides = array<i32>} : memref<1x1xf32, #tpu.memory_space<vmem>>, vector<1x1xf32>,
      %cst_43 = arith.constant 0.000000e+00 : f32
      %82 = vector.broadcast %cst_43 : f32 to vector<1x1xf32>
      %c0_44 = arith.constant 0 : index
      %c0_45 = arith.constant 0 : index
      %83 = vector.load %arg11[%c0_44, %c0_45] : memref<1x1xf32, #tpu.memory_space<vmem>>, vector<1x1xf32>
      tpu.vector_store %arg11[%c0_44, %c0_45], %82 {strides = array<i32>} : memref<1x1xf32, #tpu.memory_space<vmem>>, vector<1x1xf32>,
    } else {
    }
    %c0 = arith.constant 0 : index
    %c0_1 = arith.constant 0 : index
    %3 = vector.load %arg2[%c0, %c0_1] : memref<16x16xf32, #tpu.memory_space<vmem>>, vector<16x16xf32>
    %c0_2 = arith.constant 0 : index
    %c0_3 = arith.constant 0 : index
    %4 = vector.load %arg4[%c0_2, %c0_3] : memref<16x32xf32, #tpu.memory_space<vmem>>, vector<16x32xf32>
    %cst = arith.constant dense<0.000000e+00> : vector<16x32xf32>
    %5 = tpu.matmul %3, %4, %cst {dimension_numbers = #tpu.dot_dimension_numbers<[1], [0], [0], [1], [0, 0, 1, 1], [], []>} : vector<16x16xf32>, vector<16x32xf32>, vector<16x32xf32> -> vector<16x32xf32>
    %c0_4 = arith.constant 0 : index
    %c0_5 = arith.constant 0 : index
    %c0_6 = arith.constant 0 : index
    %6 = vector.load %arg3[%c0_4, %c0_5, %c0_6] : memref<2x16x16xf32, #tpu.memory_space<vmem>>, vector<2x16x16xf32>
    %7 = vector.shape_cast %6 : vector<2x16x16xf32> to vector<32x16xf32>
    %c0_7 = arith.constant 0 : index
    %c0_8 = arith.constant 0 : index
    %8 = vector.load %arg5[%c0_7, %c0_8] : memref<16x32xf32, #tpu.memory_space<vmem>>, vector<16x32xf32>
    %cst_9 = arith.constant dense<0.000000e+00> : vector<32x32xf32>
    %9 = tpu.matmul %7, %8, %cst_9 {dimension_numbers = #tpu.dot_dimension_numbers<[1], [0], [0], [1], [0, 0, 1, 1], [], []>} : vector<32x16xf32>, vector<16x32xf32>, vector<32x32xf32> -> vector<32x32xf32>
    %c0_10 = arith.constant 0 : index
    %c0_11 = arith.constant 0 : index
    %10 = vector.load %arg6[%c0_10, %c0_11] : memref<1x32xf32, #tpu.memory_space<vmem>>, vector<1x32xf32>
    %11 = vector.extract_strided_slice %9 {offsets = [0, 0], sizes = [16, 32], strides = [1, 1]} : vector<32x32xf32> to vector<16x32xf32>
    %12 = arith.addf %5, %11 : vector<16x32xf32>
    %13 = vector.broadcast %10 : vector<1x32xf32> to vector<16x32xf32>
    %14 = arith.addf %12, %13 : vector<16x32xf32>
    %cst_12 = arith.constant 0.000000e+00 : f32
    %15 = vector.broadcast %cst_12 : f32 to vector<16x32xf32>
    %16 = arith.maximumf %14, %15 : vector<16x32xf32>
    %17 = vector.extract_strided_slice %9 {offsets = [16, 0], sizes = [16, 32], strides = [1, 1]} : vector<32x32xf32> to vector<16x32xf32>
    %18 = arith.addf %5, %17 : vector<16x32xf32>
    %19 = vector.broadcast %10 : vector<1x32xf32> to vector<16x32xf32>
    %20 = arith.addf %18, %19 : vector<16x32xf32>
    %cst_13 = arith.constant 0.000000e+00 : f32
    %21 = vector.broadcast %cst_13 : f32 to vector<16x32xf32>
    %22 = arith.maximumf %20, %21 : vector<16x32xf32>
    %c0_14 = arith.constant 0 : index
    %c0_15 = arith.constant 0 : index
    %23 = vector.load %arg7[%c0_14, %c0_15] : memref<1x32xf32, #tpu.memory_space<vmem>>, vector<1x32xf32>
    %c1_i32 = arith.constant 1 : i32
    %24 = arith.muli %arg0, %c1_i32 : i32
    %25 = arith.addi %24, %arg1 : i32
    %c16_i32 = arith.constant 16 : i32
    %26 = arith.muli %25, %c16_i32 : i32
    %27 = tpu.iota {dimensions = array<i32: 0>} : vector<16x1xi32>
    %28 = vector.broadcast %26 : i32 to vector<16x1xi32>
    %29 = arith.addi %27, %28 : vector<16x1xi32>
    %c8_i32 = arith.constant 8 : i32
    %30 = vector.broadcast %c8_i32 : i32 to vector<16x1xi32>
    %31 = arith.cmpi slt, %29, %30 : vector<16x1xi32>
    %cst_16 = arith.constant 0.000000e+00 : f32
    %32 = vector.shape_cast %31 : vector<16x1xi1> to vector<16x1xi1>
    %33 = vector.broadcast %32 : vector<16x1xi1> to vector<16x32xi1>
    %34 = vector.broadcast %cst_16 : f32 to vector<16x32xf32>
    %35 = arith.select %33, %16, %34 : vector<16x32xi1>, vector<16x32xf32>
    %cst_17 = arith.constant dense<0.000000e+00> : vector<32xf32>
    %36 = vector.multi_reduction <add>, %35, %cst_17 [0] : vector<16x32xf32> to vector<32xf32>
    %37 = vector.shape_cast %36 : vector<32xf32> to vector<1x32xf32>
    %c0_18 = arith.constant 0 : index
    %c0_19 = arith.constant 0 : index
    %38 = vector.load %arg9[%c0_18, %c0_19] : memref<1x1xf32, #tpu.memory_space<vmem>>, vector<1x1xf32>
    %39 = arith.mulf %37, %23 : vector<1x32xf32>
    %40 = vector.shape_cast %39 : vector<1x32xf32> to vector<1x1x32xf32>
    %cst_20 = arith.constant dense<0.000000e+00> : vector<1xf32>
    %41 = vector.multi_reduction <add>, %40, %cst_20 [1, 2] : vector<1x1x32xf32> to vector<1xf32>
    %42 = vector.shape_cast %41 : vector<1xf32> to vector<1x1x1xf32>
    %43 = vector.extract %42[0, 0, 0] : f32 from vector<1x1x1xf32>
    %44 = vector.broadcast %43 : f32 to vector<1x1xf32>
    %45 = arith.addf %38, %44 : vector<1x1xf32>
    %c0_21 = arith.constant 0 : index
    %c0_22 = arith.constant 0 : index
    %46 = vector.load %arg9[%c0_21, %c0_22] : memref<1x1xf32, #tpu.memory_space<vmem>>, vector<1x1xf32>
    tpu.vector_store %arg9[%c0_21, %c0_22], %45 {strides = array<i32>} : memref<1x1xf32, #tpu.memory_space<vmem>>, vector<1x1xf32>,
    %47 = vector.broadcast %23 : vector<1x32xf32> to vector<16x32xf32>
    %48 = arith.mulf %22, %47 : vector<16x32xf32>
    %cst_23 = arith.constant dense<0.000000e+00> : vector<16xf32>
    %49 = vector.multi_reduction <add>, %48, %cst_23 [1] : vector<16x32xf32> to vector<16xf32>
    %50 = vector.shape_cast %49 : vector<16xf32> to vector<16x1xf32>
    %cst_24 = arith.constant -1.000000e+30 : f32
    %51 = vector.broadcast %cst_24 : f32 to vector<16x1xf32>
    %52 = arith.select %31, %50, %51 : vector<16x1xi1>, vector<16x1xf32>
    %c0_25 = arith.constant 0 : index
    %c0_26 = arith.constant 0 : index
    %53 = vector.load %arg10[%c0_25, %c0_26] : memref<1x1xf32, #tpu.memory_space<vmem>>, vector<1x1xf32>
    %54 = vector.shape_cast %52 : vector<16x1xf32> to vector<1x16x1xf32>
    %cst_27 = arith.constant dense<0xFF800000> : vector<1xf32>
    %55 = vector.multi_reduction <maximumf>, %54, %cst_27 [1, 2] : vector<1x16x1xf32> to vector<1xf32>
    %56 = vector.shape_cast %55 : vector<1xf32> to vector<1x1x1xf32>
    %57 = vector.extract %56[0, 0, 0] : f32 from vector<1x1x1xf32>
    %58 = vector.broadcast %57 : f32 to vector<1x1xf32>
    %59 = arith.maximumf %53, %58 : vector<1x1xf32>
    %c0_28 = arith.constant 0 : index
    %c0_29 = arith.constant 0 : index
    %60 = vector.load %arg11[%c0_28, %c0_29] : memref<1x1xf32, #tpu.memory_space<vmem>>, vector<1x1xf32>
    %61 = arith.subf %53, %59 : vector<1x1xf32>
    %62 = math.exp %61 : vector<1x1xf32>
    %63 = arith.mulf %60, %62 : vector<1x1xf32>
    %64 = vector.broadcast %59 : vector<1x1xf32> to vector<16x1xf32>
    %65 = arith.subf %52, %64 : vector<16x1xf32>
    %66 = math.exp %65 : vector<16x1xf32>
    %67 = vector.shape_cast %66 : vector<16x1xf32> to vector<1x16x1xf32>
    %cst_30 = arith.constant dense<0.000000e+00> : vector<1xf32>
    %68 = vector.multi_reduction <add>, %67, %cst_30 [1, 2] : vector<1x16x1xf32> to vector<1xf32>
    %69 = vector.shape_cast %68 : vector<1xf32> to vector<1x1x1xf32>
    %70 = vector.extract %69[0, 0, 0] : f32 from vector<1x1x1xf32>
    %71 = vector.broadcast %70 : f32 to vector<1x1xf32>
    %72 = arith.addf %63, %71 : vector<1x1xf32>
    %c0_31 = arith.constant 0 : index
    %c0_32 = arith.constant 0 : index
    %73 = vector.load %arg11[%c0_31, %c0_32] : memref<1x1xf32, #tpu.memory_space<vmem>>, vector<1x1xf32>
    tpu.vector_store %arg11[%c0_31, %c0_32], %72 {strides = array<i32>} : memref<1x1xf32, #tpu.memory_space<vmem>>, vector<1x1xf32>,
    %c0_33 = arith.constant 0 : index
    %c0_34 = arith.constant 0 : index
    %74 = vector.load %arg10[%c0_33, %c0_34] : memref<1x1xf32, #tpu.memory_space<vmem>>, vector<1x1xf32>
    tpu.vector_store %arg10[%c0_33, %c0_34], %59 {strides = array<i32>} : memref<1x1xf32, #tpu.memory_space<vmem>>, vector<1x1xf32>,
    %c0_i32_35 = arith.constant 0 : i32
    %75 = arith.cmpi eq, %arg1, %c0_i32_35 : i32
    %76 = arith.extui %75 : i1 to i32
    %c0_i32_36 = arith.constant 0 : i32
    %77 = arith.cmpi ne, %76, %c0_i32_36 : i32
    scf.if %77 {
      %78 = tpu.iota {dimensions = array<i32: 2>} : vector<1x1x128xi32>
      %c0_37 = arith.constant 0 : index
      %c0_38 = arith.constant 0 : index
      %79 = vector.load %arg9[%c0_37, %c0_38] : memref<1x1xf32, #tpu.memory_space<vmem>>, vector<1x1xf32>
      %80 = vector.shape_cast %79 : vector<1x1xf32> to vector<1x1x1xf32>
      %c0_39 = arith.constant 0 : index
      %c0_40 = arith.constant 0 : index
      %81 = vector.load %arg10[%c0_39, %c0_40] : memref<1x1xf32, #tpu.memory_space<vmem>>, vector<1x1xf32>
      %82 = vector.shape_cast %81 : vector<1x1xf32> to vector<1x1x1xf32>
      %c0_41 = arith.constant 0 : index
      %c0_42 = arith.constant 0 : index
      %83 = vector.load %arg11[%c0_41, %c0_42] : memref<1x1xf32, #tpu.memory_space<vmem>>, vector<1x1xf32>
      %84 = vector.shape_cast %83 : vector<1x1xf32> to vector<1x1x1xf32>
      %c0_i32_43 = arith.constant 0 : i32
      %85 = vector.broadcast %c0_i32_43 : i32 to vector<1x1x128xi32>
      %86 = arith.cmpi eq, %78, %85 : vector<1x1x128xi32>
      %c1_i32_44 = arith.constant 1 : i32
      %87 = vector.broadcast %c1_i32_44 : i32 to vector<1x1x128xi32>
      %88 = arith.cmpi eq, %78, %87 : vector<1x1x128xi32>
      %c2_i32 = arith.constant 2 : i32
      %89 = vector.broadcast %c2_i32 : i32 to vector<1x1x128xi32>
      %90 = arith.cmpi eq, %78, %89 : vector<1x1x128xi32>
      %cst_45 = arith.constant 0.000000e+00 : f32
      %91 = vector.shape_cast %84 : vector<1x1x1xf32> to vector<1x1x1xf32>
      %92 = vector.broadcast %91 : vector<1x1x1xf32> to vector<1x1x128xf32>
      %93 = vector.broadcast %cst_45 : f32 to vector<1x1x128xf32>
      %94 = arith.select %90, %92, %93 : vector<1x1x128xi1>, vector<1x1x128xf32>
      %95 = vector.shape_cast %82 : vector<1x1x1xf32> to vector<1x1x1xf32>
      %96 = vector.broadcast %95 : vector<1x1x1xf32> to vector<1x1x128xf32>
      %97 = arith.select %88, %96, %94 : vector<1x1x128xi1>, vector<1x1x128xf32>
      %98 = vector.shape_cast %80 : vector<1x1x1xf32> to vector<1x1x1xf32>
      %99 = vector.broadcast %98 : vector<1x1x1xf32> to vector<1x1x128xf32>
      %100 = arith.select %86, %99, %97 : vector<1x1x128xi1>, vector<1x1x128xf32>
      %c0_46 = arith.constant 0 : index
      %c0_47 = arith.constant 0 : index
      %c0_48 = arith.constant 0 : index
      %101 = vector.load %arg8[%c0_46, %c0_47, %c0_48] : memref<1x1x128xf32, #tpu.memory_space<vmem>>, vector<1x1x128xf32>
      tpu.vector_store %arg8[%c0_46, %c0_47, %c0_48], %100 {strides = array<i32>} : memref<1x1x128xf32, #tpu.memory_space<vmem>>, vector<1x1x128xf32>,
    } else {
    }
    return
  }
  func.func @transform_0(%arg0: i32, %arg1: i32) -> (i32, i32) {
    %c1_i32 = arith.constant 1 : i32
    %0 = arith.muli %arg0, %c1_i32 : i32
    %1 = arith.addi %0, %arg1 : i32
    %c0_i32 = arith.constant 0 : i32
    %c0_i32_0 = arith.constant 0 : i32
    return %1, %c0_i32 : i32, i32
  }
  func.func @transform_1(%arg0: i32, %arg1: i32) -> (i32, i32, i32) {
    %c1_i32 = arith.constant 1 : i32
    %0 = arith.muli %arg0, %c1_i32 : i32
    %1 = arith.addi %0, %arg1 : i32
    %c0_i32 = arith.constant 0 : i32
    %c0_i32_0 = arith.constant 0 : i32
    %c0_i32_1 = arith.constant 0 : i32
    return %c0_i32, %1, %c0_i32_0 : i32, i32, i32
  }
  func.func @transform_2(%arg0: i32, %arg1: i32) -> (i32, i32) {
    %c0_i32 = arith.constant 0 : i32
    %c0_i32_0 = arith.constant 0 : i32
    %c0_i32_1 = arith.constant 0 : i32
    return %c0_i32, %c0_i32_0 : i32, i32
  }
  func.func @transform_3(%arg0: i32, %arg1: i32) -> (i32, i32) {
    %c0_i32 = arith.constant 0 : i32
    %c0_i32_0 = arith.constant 0 : i32
    %c0_i32_1 = arith.constant 0 : i32
    return %c0_i32, %c0_i32_0 : i32, i32
  }
  func.func @transform_4(%arg0: i32, %arg1: i32) -> (i32, i32) {
    %c0_i32 = arith.constant 0 : i32
    %c0_i32_0 = arith.constant 0 : i32
    %c0_i32_1 = arith.constant 0 : i32
    return %c0_i32, %c0_i32_0 : i32, i32
  }
  func.func @transform_5(%arg0: i32, %arg1: i32) -> (i32, i32) {
    %c0_i32 = arith.constant 0 : i32
    %c0_i32_0 = arith.constant 0 : i32
    %c0_i32_1 = arith.constant 0 : i32
    return %c0_i32, %c0_i32_0 : i32, i32
  }
  func.func @transform_6(%arg0: i32, %arg1: i32) -> (i32, i32, i32) {
    %c0_i32 = arith.constant 0 : i32
    %c0_i32_0 = arith.constant 0 : i32
    %c0_i32_1 = arith.constant 0 : i32
    return %arg0, %c0_i32, %c0_i32_0 : i32, i32, i32
  }
}

</mosaic_0001>

<bundles_post_ra>
// kernel: tpu_custom_call.1
= control target key start
LH: loop header
LB: loop body
LE: loop exit
PB: predicated region body
PF: predicated region fallthrough
CT: control target
= control target key end

     0   :  { %11 = vsyncpa [#allocation6], 0  ;;  %s813_s0 = inlined_call_operand.hbm [shape: f32[16,16], index: 0, kind: input, shape index: {}]   ;;  %s814_s1 = inlined_call_operand.hbm [shape: f32[2,16,16], index: 1, kind: input, shape index: {}]   ;;  %s815_s2 = inlined_call_operand.hbm [shape: f32[16,32], index: 2, kind: input, shape index: {}]   ;;  %s816_s3 = inlined_call_operand.hbm [shape: f32[16,32], index: 3, kind: input, shape index: {}]   ;;  %s817_s4 = inlined_call_operand.vmem [shape: f32[1,32], index: 4, kind: input, shape index: {}]   ;;  %s818_s5 = inlined_call_operand.vmem [shape: f32[1,32], index: 5, kind: input, shape index: {}]   ;;  %s819_s6 = inlined_call_operand.hbm [shape: f32[1,1,128], index: 6, kind: output, shape index: {}]  }
   0x1   :  { %12 = vsyncpa [#allocation9], 0 }
   0x2   :  { %13 = vsyncpa [#allocation12], 0 }
   0x3   :  { %14 = vsyncpa [#allocation7], 0  ;;  %s655_s21 = smov [#allocation8]   ;;  %s656_s23 = smov [#allocation5]  }
   0x4   :  { %s40_s22 = sshll.u32 %s655_s21, 4  ;;  %s24_s24 = sshll.u32 %s656_s23, 4  ;;  %s41_s22 = int_to_ptr.vmem [resolvable:$true] %s40_s22  ;;  %s700_s24 = int_to_ptr.vmem [resolvable:$true] %s24_s24 }
   0x5   :  { %s537_s27 = scalar_lea.hbm %s814_s1, 512 }
   0x6   :  { %p538_p0 = scmp.ne.s32.totalorder %s814_s1, %s537_s27  ;;  %p541_p1 = scmp.lt.u32.totalorder %s537_s27, %s814_s1 }
   0x8   :  { %p543_p2 = pnand %p541_p1, %p538_p0 }
   0xa   :  { %546 = shalt.err (!%p543_p2)
}
   0xb   :  { %s547_s8 = scalar_lea.vmem %s41_s22, 512  ;;  %p552_p4 = scmp.lt.s32.totalorder %s41_s22, %s41_s22 }
   0xc   :  { %p548_p3 = scmp.ne.s32.totalorder %s41_s22, %s547_s8  ;;  %p553_p5 = scmp.lt.s32.totalorder %s547_s8, %s547_s8 }
   0xe   :  { %p554_p6 = por %p553_p5, %p552_p4 }
  0x10   :  { %p555_p7 = pnand %p554_p6, %p548_p3 }
  0x12   :  { %558 = shalt.err (!%p555_p7)
}
  0x13   :  { %s657_s9 = smov 128   ;;  %s658_s10 = smov 8  }
  0x14   :  { %46 = dma.hbm_to_vmem [thread:$0]  %s814_s1, 512, %s41_s22, [#allocation9], %s657_s9, %s657_s9, %s658_s10  }
  0x15   :  { %s559_s15 = scalar_lea.hbm %s813_s0, 256 }
  0x16   :  { %p560_p8 = scmp.ne.s32.totalorder %s813_s0, %s559_s15  ;;  %p563_p9 = scmp.lt.u32.totalorder %s559_s15, %s813_s0 }
  0x18   :  { %p565_p10 = pnand %p563_p9, %p560_p8 }
  0x1a   :  { %568 = shalt.err (!%p565_p10)
}
  0x1b   :  { %s569_s20 = scalar_lea.vmem %s700_s24, 256  ;;  %p574_p12 = scmp.lt.s32.totalorder %s700_s24, %s700_s24 }
  0x1c   :  { %p570_p11 = scmp.ne.s32.totalorder %s700_s24, %s569_s20  ;;  %p575_p13 = scmp.lt.s32.totalorder %s569_s20, %s569_s20 }
  0x1e   :  { %p576_p0 = por %p575_p13, %p574_p12 }
  0x20   :  { %p577_p1 = pnand %p576_p0, %p570_p11 }
  0x22   :  { %580 = shalt.err (!%p577_p1)
}
  0x23   :  { %30 = dma.hbm_to_vmem [thread:$0]  %s813_s0, 256, %s700_s24, [#allocation6], %s657_s9, %s657_s9, %s658_s10  }
  0x24   :  { %s659_s22 = smov [#allocation10]   ;;  %s660_s25 = smov [#allocation11]  }
  0x25   :  { %s52_s23 = sshll.u32 %s659_s22, 4  ;;  %s64_s26 = sshll.u32 %s660_s25, 4  ;;  %s53_s23 = int_to_ptr.vmem [resolvable:$true] %s52_s23  ;;  %s737_s26 = int_to_ptr.vmem [resolvable:$true] %s64_s26 }
  0x26   :  { %s581_s29 = scalar_lea.hbm %s815_s2, 256 }
  0x27   :  { %p582_p2 = scmp.ne.s32.totalorder %s815_s2, %s581_s29  ;;  %p585_p3 = scmp.lt.u32.totalorder %s581_s29, %s815_s2 }
  0x29   :  { %p587_p4 = pnand %p585_p3, %p582_p2 }
  0x2b   :  { %590 = shalt.err (!%p587_p4)
}
  0x2c   :  { %s591_s0 = scalar_lea.vmem %s53_s23, 256  ;;  %p596_p6 = scmp.lt.s32.totalorder %s53_s23, %s53_s23 }
  0x2d   :  { %p592_p5 = scmp.ne.s32.totalorder %s53_s23, %s591_s0  ;;  %p597_p7 = scmp.lt.s32.totalorder %s591_s0, %s591_s0 }
  0x2f   :  { %p598_p8 = por %p597_p7, %p596_p6 }
  0x31   :  { %p599_p9 = pnand %p598_p8, %p592_p5 }
  0x33   :  { %602 = shalt.err (!%p599_p9)
}
  0x34   :  { %58 = dma.hbm_to_vmem [thread:$0]  %s815_s2, 256, %s53_s23, [#allocation9], %s657_s9, %s657_s9, %s658_s10  }
  0x35   :  { %s603_s15 = scalar_lea.hbm %s816_s3, 256 }
  0x36   :  { %p604_p10 = scmp.ne.s32.totalorder %s816_s3, %s603_s15  ;;  %p607_p11 = scmp.lt.u32.totalorder %s603_s15, %s816_s3 }
  0x38   :  { %p609_p12 = pnand %p607_p11, %p604_p10 }
  0x3a   :  { %612 = shalt.err (!%p609_p12)
}
  0x3b   :  { %s613_s20 = scalar_lea.vmem %s737_s26, 256  ;;  %p618_p0 = scmp.lt.s32.totalorder %s737_s26, %s737_s26 }
  0x3c   :  { %p614_p13 = scmp.ne.s32.totalorder %s737_s26, %s613_s20  ;;  %p619_p1 = scmp.lt.s32.totalorder %s613_s20, %s613_s20 }
  0x3e   :  { %p620_p2 = por %p619_p1, %p618_p0 }
  0x40   :  { %p621_p3 = pnand %p620_p2, %p614_p13 }
  0x42   :  { %624 = shalt.err (!%p621_p3)
}
  0x43   :  { %70 = dma.hbm_to_vmem [thread:$0]  %s816_s3, 256, %s737_s26, [#allocation12], %s657_s9, %s657_s9, %s658_s10  }
  0x44   :  { %647 = dma.done.wait [#allocation6], 256  }
  0x45   :  { %648 = vsyncadd [#allocation6], 4294967040 }
  0x46   :  { %649 = dma.done.wait [#allocation9], 768  }
  0x47   :  { %650 = vsyncadd [#allocation9], 4294966528 }
  0x48   :  { %651 = dma.done.wait [#allocation12], 256  }
  0x49   :  { %652 = vsyncadd [#allocation12], 4294967040  ;;  %vm103_vm0 = vcmask 130048   ;;  %v101_v0 = vld [vmem:[#allocation10] sm:$0xff]  ;;  %v102_v1 = vld [vmem:[#allocation10 + $0x8] sm:$0xff]  ;;  %v352_v12 = vlaneseq  ;;  %vm324_vm1 = vcmask 261120  }
  0x4a   :  { %v189_v2 = vld [vmem:[#allocation11] sm:$0xff]  ;;  %v505_v3 = vpack.c.bf16 %v102_v1, %v101_v0  ;;  %v190_v4 = vld [vmem:[#allocation11 + $0x8] sm:$0xff]  ;;  %v185_v6 = vld [vmem:[#allocation8] sm:$0xff]  ;;  %vm336_vm2 = vcmask 253952   ;;  %vm95_vm3 = vcmask 0   ;;  %v661_v41 = vmov 0.0  }
  0x4b   :  { %v99_v5 = vld [vmem:[#allocation5] sm:$0xff]  ;;  %v509_v7 = vpack.c.bf16 %v190_v4, %v189_v2  ;;  %499 = vmatprep.mubr.msk.f32.mxu1 %vm103_vm0, %v185_v6  ;;  %v100_v8 = vld [vmem:[#allocation5 + $0x8] sm:$0xff]  ;;  %v186_v9 = vld [vmem:[#allocation8 + $0x8] sm:$0xff]  ;;  %v353_v16 = vshrl.u32 %v352_v12, 7  ;;  %96 = vst.msk [vmem:[#allocation2] sm:$0x1] %vm95_vm3, %v661_v41 }
  0x4c   :  { %492 = vmatprep.mubr.msk.f32.mxu0 %vm103_vm0, %v99_v5  ;;  %506 = vmatprep.subr.bf16.mxu0 %v505_v3  ;;  %v187_v10 = vld [vmem:[#allocation8 + $0x10] sm:$0xff]  ;;  %v188_v11 = vld [vmem:[#allocation8 + $0x18] sm:$0xff]  ;;  %v477_v18 = vld [vmem:[%s817_s4] ss:$0 sm:$0xff]  ;;  %98 = vst.msk [vmem:[#allocation4] sm:$0x1] %vm95_vm3, %v661_v41 }
  0x4d   :  { %510 = vmatprep.subr.bf16.mxu1 %v509_v7  ;;  %508 = vmatpush3.bf16.msra.mxu0 %v505_v3  ;;  %v784_v22 = vsub.s32 0, %v353_v16  ;;  %v307_v24 = vld [vmem:[%s818_s5] sm:$0x1]  ;;  %v662_v42 = vmov -1e+30   ;;  %v663_v43 = vmov 0  }
  0x4e   :  { %512 = vmatpush3.bf16.msra.mxu1 %v509_v7  ;;  %97 = vst.msk [vmem:[#allocation3] sm:$0x1] %vm95_vm3, %v662_v42  ;;  %530 = vset.pattern.permute.xlu0 %v663_v43  ;;  %vm395_vm4 = vcmask 7168   ;;  %s664_s23 = smov [#allocation13]  }
  0x4f   :  { %v355_v28 = vrot.slane %v307_v24, %v784_v22  ;;  %529 = vset.pattern.permute.xlu1 %v663_v43  ;;  %s460_s25 = sshll.u32 %s664_s23, 4  ;;  %s461_s25 = int_to_ptr.vmem [resolvable:$true] %s460_s25 }
  0x50   :  { %493 = vmatmul.mubr.msk.f32.vlgmr.msra.gmra.mrb[0].mxu0 %vm103_vm0, %v100_v8  ;;  %s625_s26 = scalar_lea.vmem %s461_s25, 16  ;;  %s629_s27 = scalar_lea.vmem %s461_s25, 32 }
  0x51   :  { %500 = vmatmul.mubr.msk.f32.vlgmr.msra.gmra.mrb[0].mxu1 %vm103_vm0, %v186_v9  ;;  %p626_p4 = scmp.ne.s32.totalorder %s461_s25, %s625_s26  ;;  %p630_p5 = scmp.lt.s32.totalorder %s461_s25, %s461_s25 }
  0x52   :  { %502 = vmatprep.mubr.msk.f32.mxu1 %vm103_vm0, %v187_v10  ;;  %v334_v59 = vld [vmem:[#allocation2] sm:$0x1]  ;;  %p631_p6 = scmp.lt.s32.totalorder %s629_s27, %s625_s26 }
  0x54   :  { %p632_p7 = por %p631_p6, %p630_p5 }
  0x55   :  { %503 = vmatmul.mubr.msk.f32.gmra.mrb[2].mxu1 %vm103_vm0, %v188_v11  ;;  %v367_v60 = vld [vmem:[#allocation3] sm:$0x1] }
  0x56   :  { %p633_p8 = pnand %p632_p7, %p626_p4 }
 0x123   :  { %v494_v13 = vpop.f32.mrb[0].mxu0 }
 0x124   :  { %v501_v14 = vpop.f32.mrb[0].mxu1  ;;  %v176_v15 = vpop.f32.mrb[1].mxu0 }
 0x125   :  { %v269_v17 = vpop.f32.mrb[1].mxu1 }
 0x126   :  { %v289_v19 = vadd.f32 %v269_v17, %v176_v15 }
 0x128   :  { %v297_v20 = vadd.f32 %v477_v18, %v289_v19  ;;  %v504_v21 = vpop.f32.mrb[2].mxu1 }
 0x129   :  { %v279_v23 = vpop.f32.mrb[3].mxu1 }
 0x12a   :  { %v299_v25 = vmax.f32 %v297_v20, 0.0  ;;  %v301_v26 = vadd.f32 %v279_v23, %v176_v15 }
 0x12c   :  { %v303_v27 = vadd.f32 %v477_v18, %v301_v26  ;;  %v325_v29 = vsel %vm324_vm1, %v299_v25, 0.0 }
 0x12d   :  { %v328_v30 = vrot.slane %v325_v29, 4 }
 0x12e   :  { %v305_v31 = vmax.f32 %v303_v27, 0.0 }
 0x12f   :  { %v329_v32 = vadd.f32 %v328_v30, %v325_v29  ;;  %v416_v30 = vand.u32 127, %v352_v12 }
 0x130   :  { %v357_v33 = vmul.f32 %v355_v28, %v305_v31 }
 0x131   :  { %v330_v34 = vrot.slane %v329_v32, 2  ;;  %vm422_vm5 = vcmp.eq.s32.totalorder %v416_v30, 2  ;;  %vm421_vm6 = vcmp.eq.s32.totalorder %v416_v30, 1  ;;  %vm420_vm7 = vcmp.eq.s32.totalorder %v416_v30, 0 }
 0x132   :  { %v359_v35 = vsel %vm324_vm1, %v357_v33, 0.0 }
 0x133   :  { %360 = vadd.xlane.f32.xlu0 %v359_v35  ;;  %v331_v36 = vadd.f32 %v330_v34, %v329_v32 }
 0x135   :  { %v332_v37 = vrot.slane %v331_v36, 1 }
 0x137   :  { %v333_v38 = vadd.f32 %v332_v37, %v331_v36 }
 0x139   :  { %v335_v39 = vmul.f32 %v333_v38, %v307_v24  ;;  %v378_v24 = vld [vmem:[#allocation4] sm:$0x1] }
 0x13b   :  { %v337_v40 = vsel %vm336_vm2, %v335_v39, 0.0 }
 0x13c   :  { %338 = vadd.xlane.f32.xlu0 %v337_v40 }
 0x1c0   :  { %v361_v44 = vpop.xlane.xlu0 %360 }
 0x1c1   :  { %v368_v45 = vmax.f32 %v361_v44, -1e+30 }
 0x1c3   :  { %v369_v46 = vrot.slane %v368_v45, 4 }
 0x1c5   :  { %v370_v47 = vmax.f32 %v368_v45, %v369_v46 }
 0x1c7   :  { %v371_v49 = vrot.slane %v370_v47, 2 }
 0x1c9   :  { %v339_v48 = vpop.xlane.xlu0 %338  ;;  %v372_v52 = vmax.f32 %v370_v47, %v371_v49 }
 0x1ca   :  { %v340_v50 = vrot.slane %v339_v48, 4 }
 0x1cb   :  { %v373_v55 = vrot.slane %v372_v52, 1 }
 0x1cc   :  { %v341_v51 = vadd.f32 %v340_v50, %v339_v48 }
 0x1cd   :  { %v374_v58 = vmax.f32 %v372_v52, %v373_v55 }
 0x1ce   :  { %v342_v53 = vrot.slane %v341_v51, 2 }
 0x1d0   :  { %v343_v54 = vadd.f32 %v342_v53, %v341_v51 }
 0x1d2   :  { %v344_v56 = vrot.slane %v343_v54, 1 }
 0x1d4   :  { %v345_v57 = vadd.f32 %v344_v56, %v343_v54 }
 0x1d6   :  { %513 = vpush %v345_v57 }
 0x1d7   :  { %515 = vpush %v374_v58 }
 0x207   :  { %s514_s4 = spop %513 }
 0x208   :  { %v347_v61 = vstv %s514_s4  ;;  %s516_s5 = spop %515 }
 0x209   :  { %v348_v62 = vadd.f32 %v347_v61, %v334_v59  ;;  %v376_v63 = vstv %s516_s5 }
 0x20a   :  { %v377_v0 = vmax.f32 %v367_v60, %v376_v63 }
 0x20b   :  { %350 = vst.msk [vmem:[#allocation2] sm:$0x1] %vm95_vm3, %v348_v62 }
 0x20c   :  { %v379_v1 = vsub.f32 %v367_v60, %v377_v0  ;;  %v387_v2 = vrot.slane %v377_v0, %v784_v22  ;;  %411 = vst.msk [vmem:[#allocation3] sm:$0x1] %vm95_vm3, %v377_v0 }
 0x20e   :  { %v389_v3 = vsub.f32 %v361_v44, %v387_v2  ;;  %v390_v4 = vsub.f32 -1e+30, %v387_v2  ;;  %v380_v21 = vmul.f32 1.442695, %v379_v1 }
 0x210   :  { %v391_v5 = vmul.f32 1.442695, %v389_v3  ;;  %v393_v6 = vmul.f32 1.442695, %v390_v4 }
 0x212   :  { %531 = vpow2.f32 %v391_v5  ;;  %v417_v29 = vld [vmem:[#allocation2] sm:$0x1] }
 0x213   :  { %533 = vpow2.f32 %v393_v6  ;;  %v418_v7 = vld [vmem:[#allocation3] sm:$0x1] }
 0x214   :  { %435 = vperm.xlu0 %530, %v418_v7   ;;  %535 = vpow2.f32 %v380_v21 }
 0x21c   :  { %v532_v8 = vpop.eup %531 }
 0x21d   :  { %v534_v9 = vpop.eup %533  ;;  %v396_v10 = vsel %vm395_vm4, %v532_v8, 0.0 }
 0x21e   :  { %v397_v11 = vsel %vm395_vm4, %v534_v9, 0.0  ;;  %v536_v23 = vpop.eup %535 }
 0x21f   :  { %v398_v13 = vadd.f32 %v397_v11, %v396_v10  ;;  %v382_v25 = vmul.f32 %v536_v23, %v378_v24 }
 0x221   :  { %399 = vadd.xlane.f32.xlu1 %v398_v13 }
 0x293   :  { %v436_v32 = vpop.permute.xlu0 %435 }
 0x294   :  { %v441_v35 = vrot.slane %v436_v32, %v784_v22 }
 0x2ae   :  { %v400_v14 = vpop.xlane.xlu1 %399 }
 0x2af   :  { %v401_v15 = vrot.slane %v400_v14, 4 }
 0x2b1   :  { %v402_v16 = vadd.f32 %v401_v15, %v400_v14 }
 0x2b3   :  { %v403_v17 = vrot.slane %v402_v16, 2 }
 0x2b5   :  { %v404_v18 = vadd.f32 %v403_v17, %v402_v16 }
 0x2b7   :  { %v405_v19 = vrot.slane %v404_v18, 1 }
 0x2b9   :  { %v406_v20 = vadd.f32 %v405_v19, %v404_v18 }
 0x2bb   :  { %517 = vpush %v406_v20 }
 0x2ec   :  { %s518_s22 = spop %517 }
 0x2ed   :  { %v408_v26 = vstv %s518_s22 }
 0x2ee   :  { %v409_v27 = vadd.f32 %v408_v26, %v382_v25 }
 0x2f0   :  { %410 = vst.msk [vmem:[#allocation4] sm:$0x1] %vm95_vm3, %v409_v27 }
 0x2f7   :  { %v419_v28 = vld [vmem:[#allocation4] sm:$0x1] }
 0x2f8   :  { %425 = vperm.xlu1 %529, %v419_v28  }
 0x2fc   :  { %445 = vperm.xlu1 %529, %v417_v29  }
 0x377   :  { %v426_v31 = vpop.permute.xlu1 %425 }
 0x378   :  { %v431_v33 = vrot.slane %v426_v31, %v784_v22 }
 0x37a   :  { %v432_v34 = vsel %vm422_vm5, %v431_v33, 0.0 }
 0x37b   :  { %v446_v36 = vpop.permute.xlu1 %445  ;;  %v442_v38 = vsel %vm421_vm6, %v441_v35, %v432_v34 }
 0x37c   :  { %v451_v37 = vrot.slane %v446_v36, %v784_v22 }
 0x37e   :  { %v452_v39 = vsel %vm420_vm7, %v451_v37, %v442_v38 }
 0x37f   :  { %453 = vst [vmem:[#allocation13] sm:$0x1] %v452_v39 }
 0x380   :  { %636 = shalt.err (!%p633_p8)
}
 0x381   :  { %s637_s30 = scalar_lea.hbm %s819_s6, 16 }
 0x382   :  { %p638_p9 = scmp.ne.s32.totalorder %s819_s6, %s637_s30  ;;  %p641_p10 = scmp.lt.u32.totalorder %s637_s30, %s819_s6 }
 0x384   :  { %p643_p11 = pnand %p641_p10, %p638_p9 }
 0x386   :  { %646 = shalt.err (!%p643_p11)
}
 0x387   :  { %463 = dma.vmem_to_hbm [thread:$0]  %s461_s25, 16, %s819_s6, [#allocation7]  }
 0x388   :  { %653 = dma.done.wait [#allocation7], 16  }
 0x389   :  { %654 = vsyncadd [#allocation7], 4294967280 }
 0x38a   :  { %467 = vsyncpa [#allocation6], 1 }
 0x38b   :  { %468 = vsyncpa [#allocation9], 1 }
 0x38c   :  { %469 = vsyncpa [#allocation12], 1 }
 0x38d   :  { %470 = vsyncpa [#allocation7], 1 }

</bundles_post_ra>
